<compile_context>
chip_gen: v7x
topology: tpu7x:2x2x1
jax: 0.10.0
libtpu: 0.0.40
codegen_flags: <defaults>
</compile_context>

<pallas_src>
import functools

import jax
import jax.numpy as jnp
from jax.experimental import pallas as pl
from jax.experimental.pallas import tpu as pltpu

_EPS = 1e-6                         # F.pairwise_distance default eps
_LANE = 128
_TARGET_BLOCK_BYTES = 4 * 1024 * 1024   # ~4 MiB of HBM per input per grid step
_ROW_ALIGN = 128                        # row multiple for multi-block tiles
_MIN_SPLIT_ROWS = 1024                  # below this, a core split is not worth it
_VMEM_LIMIT_BYTES = 40 * 1024 * 1024    # 2 inputs x 2 bufs x 4 MiB + headroom


def _cdiv(a, b):
    return -(-a // b)


def _round_up(x, m):
    return ((x + m - 1) // m) * m


def _tensorcores_per_device():
    """TensorCores addressable by one JAX device (v7x / megacore -> 2)."""
    try:
        kind = jax.devices()[0].device_kind.lower()
    except Exception:
        return 1
    if ("v7" in kind) or ("v5p" in kind) or ("v4" in kind):
        return 2
    return 1


def _sumsq_kernel(a_ref, b_ref, out_ref, acc_ref, *,
                  tile_rows, blocks_per_core, rows):
    """Accumulate per-lane partial sums of (a - b + eps)^2 for one core split."""
    c = pl.program_id(0)          # core-split index ("parallel")
    j = pl.program_id(1)          # reduction step   ("arbitrary")

    @pl.when(j == 0)
    def _init():
        acc_ref[...] = jnp.zeros_like(acc_ref)

    diff = a_ref[...].astype(jnp.float32) - b_ref[...].astype(jnp.float32) + _EPS
    sq = diff * diff

    # Static (Python-level): only the last global block can be partial.
    needs_mask = (rows % tile_rows) != 0
    if needs_mask:
        gb = c * blocks_per_core + j                          # global block idx
        valid_rows = jnp.minimum(rows - gb * tile_rows, tile_rows)

        @pl.when(valid_rows == tile_rows)
        def _full():
            acc_ref[...] += jnp.sum(sq, axis=0, keepdims=True)

        @pl.when(valid_rows < tile_rows)
        def _partial():
            rid = jax.lax.broadcasted_iota(jnp.int32, sq.shape, 0)
            # Keep this a select (not multiply-by-mask): OOB rows may be NaN/Inf.
            acc_ref[...] += jnp.sum(jnp.where(rid < valid_rows, sq, 0.0),
                                    axis=0, keepdims=True)
    else:
        acc_ref[...] += jnp.sum(sq, axis=0, keepdims=True)

    @pl.when(j == pl.num_programs(1) - 1)
    def _finalize():
        out_ref[...] = acc_ref[...].reshape(out_ref.shape)


@functools.partial(jax.jit, static_argnames=("margin",))
def _contrastive_loss_impl(output1, output2, label, *, margin):
    a = output1.reshape(-1)
    b = output2.reshape(-1)
    n = a.shape[0]

    rows = n // _LANE
    tail = n - rows * _LANE

    # <128-element tail handled by a tiny jnp epilogue (no padded full copies).
    tail_ss = jnp.float32(0.0)
    if tail:
        at = a[rows * _LANE:].astype(jnp.float32)
        bt = b[rows * _LANE:].astype(jnp.float32)
        tail_ss = jnp.sum((at - bt + _EPS) ** 2)

    if rows == 0:
        ss = tail_ss
    else:
        a2 = a[:rows * _LANE].reshape(rows, _LANE)   # contiguous prefix, free reshape
        b2 = b[:rows * _LANE].reshape(rows, _LANE)

        # dtype-aware tile: keep ~4 MiB of HBM per input per step
        # (f32 -> 8192 rows, bf16 -> 16384 rows).
        itemsize_a = jnp.dtype(a.dtype).itemsize
        itemsize_b = jnp.dtype(b.dtype).itemsize
        max_tile_rows = max(
            _ROW_ALIGN,
            (_TARGET_BLOCK_BYTES // (_LANE * itemsize_a)) // _ROW_ALIGN * _ROW_ALIGN)

        ncores = _tensorcores_per_device()
        if ncores > 1 and rows < _MIN_SPLIT_ROWS:
            ncores = 1

        if rows <= max_tile_rows and ncores == 1:
            tile_rows = rows          # full first dim: (8,128) rule satisfied trivially
            num_blocks = 1
        else:
            # Even split across cores: block count is a multiple of ncores,
            # tile size re-derived so every (c, j) maps to a real block
            # (no clamped / duplicated DMA, no overflow iterations).
            nblocks = max(_cdiv(rows, max_tile_rows), ncores)
            nblocks = _round_up(nblocks, ncores)
            tile_rows = min(_round_up(_cdiv(rows, nblocks), _ROW_ALIGN),
                            max_tile_rows)
            num_blocks = _cdiv(rows, tile_rows)

        if num_blocks % ncores != 0:      # rare rounding collapse: drop core split
            ncores = 1
        blocks_per_core = num_blocks // ncores

        def in_map(c, j):
            return (c * blocks_per_core + j, 0)

        cost = pl.CostEstimate(
            flops=4 * rows * _LANE,
            transcendentals=0,
            bytes_accessed=rows * _LANE * (itemsize_a + itemsize_b)
            + ncores * _LANE * 4)

        partials = pl.pallas_call(
            functools.partial(
                _sumsq_kernel,
                tile_rows=tile_rows,
                blocks_per_core=blocks_per_core,
                rows=rows),
            out_shape=jax.ShapeDtypeStruct((ncores, 1, _LANE), jnp.float32),
            grid=(ncores, blocks_per_core),
            in_specs=[
                pl.BlockSpec((tile_rows, _LANE), in_map),
                pl.BlockSpec((tile_rows, _LANE), in_map),
            ],
            out_specs=pl.BlockSpec((1, 1, _LANE), lambda c, j: (c, 0, 0)),
            scratch_shapes=[pltpu.VMEM((1, _LANE), jnp.float32)],
            compiler_params=pltpu.CompilerParams(
                dimension_semantics=("parallel", "arbitrary"),
                vmem_limit_bytes=_VMEM_LIMIT_BYTES),
            cost_estimate=cost,
        )(a2, b2)

        ss = jnp.sum(partials) + tail_ss

    # Tiny scalar epilogue: sqrt + hinge.  Use the raw sum-of-squares for the
    # similar term (avoids the sqrt->square rounding round-trip).
    d = jnp.sqrt(ss)
    hinge = jnp.maximum(jnp.float32(margin) - d, 0.0)
    # mean over a single pair == identity
    return (1.0 - label) * ss + label * (hinge * hinge)


def contrastive_loss(output1, output2, label, margin=2.0):
    return _contrastive_loss_impl(output1, output2,
                                  jnp.asarray(label, jnp.float32),
                                  margin=float(margin))


def _reference(output1, output2, label, margin=2.0):
    d = jnp.sqrt(jnp.sum((output1.reshape(-1).astype(jnp.float32)
                          - output2.reshape(-1).astype(jnp.float32) + _EPS) ** 2))
    lab = jnp.asarray(label, jnp.float32)
    return jnp.mean((1.0 - lab) * d ** 2 +
                    lab * jnp.maximum(margin - d, 0.0) ** 2)


if __name__ == "__main__":
    key = jax.random.PRNGKey(0)
    k1, k2, k3 = jax.random.split(key, 3)

    # NCHW-shaped embeddings for the pair (small synthetic shapes).
    output1 = jax.random.normal(k1, (2, 4, 16, 16), dtype=jnp.float32)
    output2 = jax.random.normal(k2, (2, 4, 16, 16), dtype=jnp.float32)

    # dissimilar pair (label = 1)
    loss = contrastive_loss(output1, output2, jnp.float32(1.0), margin=2.0)
    jax.block_until_ready(loss)
    ref = _reference(output1, output2, 1.0, 2.0)
    assert jnp.allclose(loss, ref, rtol=1e-5, atol=1e-5), (loss, ref)

    # similar pair (label = 0)
    loss0 = contrastive_loss(output1, output2, jnp.float32(0.0), margin=2.0)
    ref0 = _reference(output1, output2, 0.0, 2.0)
    assert jnp.allclose(loss0, ref0, rtol=1e-5, atol=1e-5), (loss0, ref0)

    # hinge-active branch: nearly identical embeddings, dissimilar label
    output2c = output1 + 1e-3 * jax.random.normal(k3, output1.shape, jnp.float32)
    lossc = contrastive_loss(output1, output2c, jnp.float32(1.0), margin=2.0)
    refc = _reference(output1, output2c, 1.0, 2.0)
    assert jnp.allclose(lossc, refc, rtol=1e-5, atol=1e-5), (lossc, refc)

    # lane-unaligned input -> exercises the prefix-kernel + tail-epilogue path
    xu1 = jax.random.normal(k1, (3, 5, 7, 11), dtype=jnp.float32)
    xu2 = jax.random.normal(k2, (3, 5, 7, 11), dtype=jnp.float32)
    lu = contrastive_loss(xu1, xu2, jnp.float32(0.0), margin=2.0)
    ru = _reference(xu1, xu2, 0.0, 2.0)
    assert jnp.allclose(lu, ru, rtol=1e-5, atol=1e-5), (lu, ru)

    # multi-block + partial last block (+ even 2-way core split on v7x/megacore)
    xb1 = jax.random.normal(k1, (16484 * 128,), dtype=jnp.float32)
    xb2 = jax.random.normal(k2, (16484 * 128,), dtype=jnp.float32)
    lb = contrastive_loss(xb1, xb2, jnp.float32(0.0), margin=2.0)
    rb = _reference(xb1, xb2, 0.0, 2.0)
    assert jnp.allclose(lb, rb, rtol=1e-4, atol=1e-4), (lb, rb)

    # bf16 inputs -> dtype-scaled tile rows, f32 accumulation inside the kernel
    xh1 = jax.random.normal(k1, (4, 8, 32, 32), dtype=jnp.bfloat16)
    xh2 = jax.random.normal(k2, (4, 8, 32, 32), dtype=jnp.bfloat16)
    lh = contrastive_loss(xh1, xh2, jnp.float32(1.0), margin=2.0)
    rh = _reference(xh1, xh2, 1.0, 2.0)
    assert jnp.allclose(lh, rh, rtol=1e-4, atol=1e-4), (lh, rh)

    jax.block_until_ready((loss, loss0, lossc, lu, lb, lh))
    print("KERNEL_OK")
</pallas_src>

<mosaic_0001>
module attributes {stable_mosaic.version = 11 : i64} {
  func.func @_sumsq_kernel(%arg0: i32, %arg1: i32, %arg2: memref<16x128xf32, #tpu.memory_space<vmem>>, %arg3: memref<16x128xf32, #tpu.memory_space<vmem>>, %arg4: memref<1x1x128xf32, #tpu.memory_space<vmem>>, %arg5: memref<1x128xf32, #tpu.memory_space<vmem>>) attributes {dimension_semantics = [#tpu.dimension_semantics<parallel>, #tpu.dimension_semantics<arbitrary>], iteration_bounds = array<i64: 1, 1>, scalar_prefetch = 0 : i64, scratch_operands = 1 : i64, tpu.core_type = #tpu.core_type<tc>, window_params = [{transform_indices = @transform_0, window_bounds = array<i64: 16, 128>}, {transform_indices = @transform_1, window_bounds = array<i64: 16, 128>}, {transform_indices = @transform_2, window_bounds = array<i64: 1, 1, 128>}]} {
    %c0_i32 = arith.constant 0 : i32
    %0 = arith.cmpi eq, %arg1, %c0_i32 : i32
    %1 = arith.extui %0 : i1 to i32
    %c0_i32_0 = arith.constant 0 : i32
    %2 = arith.cmpi ne, %1, %c0_i32_0 : i32
    scf.if %2 {
      %cst_11 = arith.constant 0.000000e+00 : f32
      %17 = vector.broadcast %cst_11 : f32 to vector<1x128xf32>
      %c0_12 = arith.constant 0 : index
      %c0_13 = arith.constant 0 : index
      %18 = vector.load %arg5[%c0_12, %c0_13] : memref<1x128xf32, #tpu.memory_space<vmem>>, vector<1x128xf32>
      tpu.vector_store %arg5[%c0_12, %c0_13], %17 {strides = array<i32>} : memref<1x128xf32, #tpu.memory_space<vmem>>, vector<1x128xf32>,
    } else {
    }
    %c0 = arith.constant 0 : index
    %c0_1 = arith.constant 0 : index
    %3 = vector.load %arg2[%c0, %c0_1] : memref<16x128xf32, #tpu.memory_space<vmem>>, vector<16x128xf32>
    %c0_2 = arith.constant 0 : index
    %c0_3 = arith.constant 0 : index
    %4 = vector.load %arg3[%c0_2, %c0_3] : memref<16x128xf32, #tpu.memory_space<vmem>>, vector<16x128xf32>
    %5 = arith.subf %3, %4 : vector<16x128xf32>
    %cst = arith.constant 9.99999997E-7 : f32
    %6 = vector.broadcast %cst : f32 to vector<16x128xf32>
    %7 = arith.addf %5, %6 : vector<16x128xf32>
    %8 = arith.mulf %7, %7 : vector<16x128xf32>
    %c0_4 = arith.constant 0 : index
    %c0_5 = arith.constant 0 : index
    %9 = vector.load %arg5[%c0_4, %c0_5] : memref<1x128xf32, #tpu.memory_space<vmem>>, vector<1x128xf32>
    %cst_6 = arith.constant dense<0.000000e+00> : vector<128xf32>
    %10 = vector.multi_reduction <add>, %8, %cst_6 [0] : vector<16x128xf32> to vector<128xf32>
    %11 = vector.shape_cast %10 : vector<128xf32> to vector<1x128xf32>
    %12 = arith.addf %9, %11 : vector<1x128xf32>
    %c0_7 = arith.constant 0 : index
    %c0_8 = arith.constant 0 : index
    %13 = vector.load %arg5[%c0_7, %c0_8] : memref<1x128xf32, #tpu.memory_space<vmem>>, vector<1x128xf32>
    tpu.vector_store %arg5[%c0_7, %c0_8], %12 {strides = array<i32>} : memref<1x128xf32, #tpu.memory_space<vmem>>, vector<1x128xf32>,
    %c0_i32_9 = arith.constant 0 : i32
    %14 = arith.cmpi eq, %arg1, %c0_i32_9 : i32
    %15 = arith.extui %14 : i1 to i32
    %c0_i32_10 = arith.constant 0 : i32
    %16 = arith.cmpi ne, %15, %c0_i32_10 : i32
    scf.if %16 {
      %c0_11 = arith.constant 0 : index
      %c0_12 = arith.constant 0 : index
      %17 = vector.load %arg5[%c0_11, %c0_12] : memref<1x128xf32, #tpu.memory_space<vmem>>, vector<1x128xf32>
      %18 = vector.shape_cast %17 : vector<1x128xf32> to vector<1x1x128xf32>
      %c0_13 = arith.constant 0 : index
      %c0_14 = arith.constant 0 : index
      %c0_15 = arith.constant 0 : index
      %19 = vector.load %arg4[%c0_13, %c0_14, %c0_15] : memref<1x1x128xf32, #tpu.memory_space<vmem>>, vector<1x1x128xf32>
      tpu.vector_store %arg4[%c0_13, %c0_14, %c0_15], %18 {strides = array<i32>} : memref<1x1x128xf32, #tpu.memory_space<vmem>>, vector<1x1x128xf32>,
    } else {
    }
    return
  }
  func.func @transform_0(%arg0: i32, %arg1: i32) -> (i32, i32) {
    %c1_i32 = arith.constant 1 : i32
    %0 = arith.muli %arg0, %c1_i32 : i32
    %1 = arith.addi %0, %arg1 : i32
    %c0_i32 = arith.constant 0 : i32
    %c0_i32_0 = arith.constant 0 : i32
    return %1, %c0_i32 : i32, i32
  }
  func.func @transform_1(%arg0: i32, %arg1: i32) -> (i32, i32) {
    %c1_i32 = arith.constant 1 : i32
    %0 = arith.muli %arg0, %c1_i32 : i32
    %1 = arith.addi %0, %arg1 : i32
    %c0_i32 = arith.constant 0 : i32
    %c0_i32_0 = arith.constant 0 : i32
    return %1, %c0_i32 : i32, i32
  }
  func.func @transform_2(%arg0: i32, %arg1: i32) -> (i32, i32, i32) {
    %c0_i32 = arith.constant 0 : i32
    %c0_i32_0 = arith.constant 0 : i32
    %c0_i32_1 = arith.constant 0 : i32
    return %arg0, %c0_i32, %c0_i32_0 : i32, i32, i32
  }
}

</mosaic_0001>

<bundles_post_ra>
// kernel: _contrastive_loss_impl.1
= control target key start
LH: loop header
LB: loop body
LE: loop exit
PB: predicated region body
PF: predicated region fallthrough
CT: control target
= control target key end

     0   :  { %v102_v0 = vmov 0.0   ;;  %s133_s0 = inlined_call_operand.vmem [shape: f32[16,128], index: 0, kind: input, shape index: {}]   ;;  %s134_s1 = inlined_call_operand.vmem [shape: f32[16,128], index: 1, kind: input, shape index: {}]   ;;  %s135_s2 = inlined_call_operand.vmem [shape: f32[1,1,128], index: 2, kind: output, shape index: {}]  }
   0x1   :  { %59 = vst [vmem:[#allocation2] sm:$0x1] %v102_v0  ;;  %v60_v1 = vld [vmem:[%s133_s0] sm:$0xff]  ;;  %v61_v2 = vld [vmem:[%s133_s0 + $0x8] sm:$0xff] }
   0x2   :  { %v62_v3 = vld [vmem:[%s134_s1] sm:$0xff]  ;;  %v63_v4 = vld [vmem:[%s134_s1 + $0x8] sm:$0xff] }
   0x3   :  { %v64_v5 = vsub.f32 %v60_v1, %v62_v3  ;;  %v65_v6 = vsub.f32 %v61_v2, %v63_v4 }
   0x5   :  { %v66_v7 = vadd.f32 1e-06, %v64_v5  ;;  %v67_v8 = vadd.f32 1e-06, %v65_v6 }
   0x7   :  { %v68_v9 = vmul.f32 %v66_v7, %v66_v7  ;;  %v69_v10 = vmul.f32 %v67_v8, %v67_v8 }
   0x8   :  { %v70_v17 = vld [vmem:[#allocation2] sm:$0x1] }
   0x9   :  { %v71_v11 = vadd.f32 %v69_v10, %v68_v9 }
   0xb   :  { %v72_v12 = vrot.slane %v71_v11, 4 }
   0xd   :  { %v73_v13 = vadd.f32 %v72_v12, %v71_v11 }
   0xf   :  { %v74_v14 = vrot.slane %v73_v13, 2 }
  0x11   :  { %v75_v15 = vadd.f32 %v74_v14, %v73_v13 }
  0x13   :  { %v76_v16 = vrot.slane %v75_v15, 1 }
  0x15   :  { %v77_v18 = vadd.f32 %v76_v16, %v75_v15 }
  0x17   :  { %v78_v19 = vadd.f32 %v77_v18, %v70_v17 }
  0x19   :  { %79 = vst [vmem:[#allocation2] sm:$0x1] %v78_v19 }
  0x20   :  { %v83_v20 = vld [vmem:[#allocation2] sm:$0x1] }
  0x21   :  { %84 = vst [vmem:[%s135_s2] sm:$0x1] %v83_v20 }

</bundles_post_ra>
